<compile_context>
chip_gen: v7x
topology: tpu7x:2x2x1
jax: 0.10.0
libtpu: 0.0.40
codegen_flags: <defaults>
</compile_context>

<pallas_src>
import jax
import jax.numpy as jnp
from jax.experimental import pallas as pl
from jax.experimental.pallas import tpu as pltpu


def net_s2a_kernel(s_ref, y_ref, muw_ref, wdb_ref, o_ref):
    # s_ref: (A, L), y_ref: (bands, L), muw_ref: (A_out, A), wdb_ref: (A_out, bands)
    acc = jnp.dot(muw_ref[...], s_ref[...], preferred_element_type=jnp.float32)
    acc = acc + jnp.dot(wdb_ref[...], y_ref[...], preferred_element_type=jnp.float32)
    o_ref[...] = jnp.maximum(acc, 0.0).astype(o_ref.dtype)      # ReLU


def net_s2a_forward(mu, S, Y, Db, W):
    B, A, L = S.shape
    bands = Y.shape[1]
    A_out = W.shape[0]
    hp = jax.lax.Precision.HIGHEST

    # Tiny wrapper-side precomputes (glue / layout plumbing, not the hot path):
    muW = (mu[0] * W).astype(jnp.float32)                         # (A_out, A)
    WDb = jnp.matmul(W, Db.T, precision=hp).astype(jnp.float32)   # (A_out, bands)

    cost = pl.CostEstimate(
        flops=2 * B * A_out * (A + bands) * L,
        transcendentals=0,
        bytes_accessed=4 * (B * A * L + B * bands * L + B * A_out * L
                            + A_out * (A + bands)),
    )

    return pl.pallas_call(
        net_s2a_kernel,
        out_shape=jax.ShapeDtypeStruct((B, A_out, L), S.dtype),
        grid_spec=pltpu.PrefetchScalarGridSpec(
            num_scalar_prefetch=0,
            grid=(B,),  # B>=2 -> both v7x TensorCores get work; trivial on v5e/v6e
            in_specs=[
                pl.BlockSpec((None, A, L), lambda b: (b, 0, 0)),        # S (batch squeezed)
                pl.BlockSpec((None, bands, L), lambda b: (b, 0, 0)),    # Y (batch squeezed)
                pl.BlockSpec((A_out, A), lambda b: (0, 0)),             # mu * W
                pl.BlockSpec((A_out, bands), lambda b: (0, 0)),         # W @ Db^T
            ],
            out_specs=pl.BlockSpec((None, A_out, L), lambda b: (b, 0, 0)),
        ),
        compiler_params=pltpu.CompilerParams(dimension_semantics=("parallel",)),
        cost_estimate=cost,
    )(S, Y, muW, WDb)


def weight_init(Db0, Y0):
    # Deterministic re-implementation of the torch weight_init (pinv-based), in plain JAX.
    # Db0: (bands, A), Y0: (bands, A)  -> weight (A, A) (kernel_size=1 dim dropped)
    alpha0 = jnp.linalg.pinv(Db0) @ Y0            # (A, A)
    temp = alpha0 + Db0.T @ Y0                    # (A, A)
    alpha0_t = alpha0.T                           # transpose(0,1); squeeze(-1) is a no-op for 2-D
    temp_t = temp.T
    weight = alpha0_t @ jnp.linalg.pinv(temp_t)   # (A, A)
    return weight.astype(jnp.float32)


if __name__ == "__main__":
    key = jax.random.PRNGKey(0)
    kdb0, ky0, ks, ky, kdb = jax.random.split(key, 5)

    B, bands, A, L = 2, 8, 8, 128

    # deterministic "checkpoint-free" parameter init (mirrors Net_S2a.__init__)
    Db0 = jax.random.normal(kdb0, (bands, A), dtype=jnp.float32)
    Y0 = jax.random.normal(ky0, (bands, A), dtype=jnp.float32)
    mu = jnp.array([1.0], dtype=jnp.float32)          # nn.Parameter([1.])
    W = weight_init(Db0, Y0)                          # self.myweight (A, A, 1) -> (A, A)
    # NOTE: self.conv_a is defined in __init__ but never used in forward; omitted.

    # forward inputs
    S = jax.random.normal(ks, (B, A, L), dtype=jnp.float32)
    Y = jax.random.normal(ky, (B, bands, L), dtype=jnp.float32)
    Db = jax.random.normal(kdb, (bands, A), dtype=jnp.float32)

    out = jax.block_until_ready(net_s2a_forward(mu, S, Y, Db, W))

    # pure-JAX reference check (two-stage form, exactly mirroring the torch forward).
    # Fixed einsum labels: batch label must not clash with the 'bands' contraction label.
    hp = jax.lax.Precision.HIGHEST
    temp_ref = mu[0] * S + jnp.einsum("ab,nbl->nal", Db.T, Y, precision=hp)
    ref = jnp.maximum(jnp.einsum("oa,nal->nol", W, temp_ref, precision=hp), 0.0)
    assert out.shape == (B, A, L)
    # fused-weight kernel reassociates the f32 ops -> allow a small tolerance
    assert jnp.allclose(out, ref, atol=1e-3, rtol=1e-3)

    print("KERNEL_OK")
</pallas_src>

<mosaic_0001>
module attributes {stable_mosaic.version = 11 : i64} {
  func.func @net_s2a_kernel(%arg0: i32, %arg1: memref<1x8x128xf32, #tpu.memory_space<vmem>>, %arg2: memref<1x8x128xf32, #tpu.memory_space<vmem>>, %arg3: memref<8x8xf32, #tpu.memory_space<vmem>>, %arg4: memref<8x8xf32, #tpu.memory_space<vmem>>, %arg5: memref<1x8x128xf32, #tpu.memory_space<vmem>>) attributes {dimension_semantics = [#tpu.dimension_semantics<parallel>], iteration_bounds = array<i64: 2>, scalar_prefetch = 0 : i64, scratch_operands = 0 : i64, tpu.core_type = #tpu.core_type<tc>, window_params = [{transform_indices = @transform_0, window_bounds = array<i64: 1, 8, 128>}, {transform_indices = @transform_1, window_bounds = array<i64: 1, 8, 128>}, {pipeline_mode = #tpu.pipeline_mode<synchronous>, transform_indices = @transform_2, window_bounds = array<i64: 8, 8>}, {pipeline_mode = #tpu.pipeline_mode<synchronous>, transform_indices = @transform_3, window_bounds = array<i64: 8, 8>}, {transform_indices = @transform_4, window_bounds = array<i64: 1, 8, 128>}]} {
    %c0 = arith.constant 0 : index
    %c0_0 = arith.constant 0 : index
    %0 = vector.load %arg3[%c0, %c0_0] : memref<8x8xf32, #tpu.memory_space<vmem>>, vector<8x8xf32>
    %c0_1 = arith.constant 0 : index
    %c0_2 = arith.constant 0 : index
    %c0_3 = arith.constant 0 : index
    %1 = vector.load %arg1[%c0_1, %c0_2, %c0_3] : memref<1x8x128xf32, #tpu.memory_space<vmem>>, vector<1x8x128xf32>
    %2 = vector.shape_cast %1 : vector<1x8x128xf32> to vector<8x128xf32>
    %cst = arith.constant dense<0.000000e+00> : vector<8x128xf32>
    %3 = tpu.matmul %0, %2, %cst {dimension_numbers = #tpu.dot_dimension_numbers<[1], [0], [0], [1], [0, 0, 1, 1], [], []>} : vector<8x8xf32>, vector<8x128xf32>, vector<8x128xf32> -> vector<8x128xf32>
    %c0_4 = arith.constant 0 : index
    %c0_5 = arith.constant 0 : index
    %4 = vector.load %arg4[%c0_4, %c0_5] : memref<8x8xf32, #tpu.memory_space<vmem>>, vector<8x8xf32>
    %c0_6 = arith.constant 0 : index
    %c0_7 = arith.constant 0 : index
    %c0_8 = arith.constant 0 : index
    %5 = vector.load %arg2[%c0_6, %c0_7, %c0_8] : memref<1x8x128xf32, #tpu.memory_space<vmem>>, vector<1x8x128xf32>
    %6 = vector.shape_cast %5 : vector<1x8x128xf32> to vector<8x128xf32>
    %cst_9 = arith.constant dense<0.000000e+00> : vector<8x128xf32>
    %7 = tpu.matmul %4, %6, %cst_9 {dimension_numbers = #tpu.dot_dimension_numbers<[1], [0], [0], [1], [0, 0, 1, 1], [], []>} : vector<8x8xf32>, vector<8x128xf32>, vector<8x128xf32> -> vector<8x128xf32>
    %8 = arith.addf %3, %7 : vector<8x128xf32>
    %cst_10 = arith.constant 0.000000e+00 : f32
    %9 = vector.broadcast %cst_10 : f32 to vector<8x128xf32>
    %10 = arith.maximumf %8, %9 : vector<8x128xf32>
    %c0_11 = arith.constant 0 : index
    %c0_12 = arith.constant 0 : index
    %c0_13 = arith.constant 0 : index
    %11 = vector.load %arg5[%c0_11, %c0_12, %c0_13] : memref<1x8x128xf32, #tpu.memory_space<vmem>>, vector<1x8x128xf32>
    %12 = vector.shape_cast %11 : vector<1x8x128xf32> to vector<8x128xf32>
    %13 = vector.shape_cast %10 : vector<8x128xf32> to vector<1x8x128xf32>
    tpu.vector_store %arg5[%c0_11, %c0_12, %c0_13], %13 {strides = array<i32>} : memref<1x8x128xf32, #tpu.memory_space<vmem>>, vector<1x8x128xf32>,
    return
  }
  func.func @transform_0(%arg0: i32) -> (i32, i32, i32) {
    %c0_i32 = arith.constant 0 : i32
    %c0_i32_0 = arith.constant 0 : i32
    %c0_i32_1 = arith.constant 0 : i32
    return %arg0, %c0_i32, %c0_i32_0 : i32, i32, i32
  }
  func.func @transform_1(%arg0: i32) -> (i32, i32, i32) {
    %c0_i32 = arith.constant 0 : i32
    %c0_i32_0 = arith.constant 0 : i32
    %c0_i32_1 = arith.constant 0 : i32
    return %arg0, %c0_i32, %c0_i32_0 : i32, i32, i32
  }
  func.func @transform_2(%arg0: i32) -> (i32, i32) {
    %c0_i32 = arith.constant 0 : i32
    %c0_i32_0 = arith.constant 0 : i32
    %c0_i32_1 = arith.constant 0 : i32
    return %c0_i32, %c0_i32_0 : i32, i32
  }
  func.func @transform_3(%arg0: i32) -> (i32, i32) {
    %c0_i32 = arith.constant 0 : i32
    %c0_i32_0 = arith.constant 0 : i32
    %c0_i32_1 = arith.constant 0 : i32
    return %c0_i32, %c0_i32_0 : i32, i32
  }
  func.func @transform_4(%arg0: i32) -> (i32, i32, i32) {
    %c0_i32 = arith.constant 0 : i32
    %c0_i32_0 = arith.constant 0 : i32
    %c0_i32_1 = arith.constant 0 : i32
    return %arg0, %c0_i32, %c0_i32_0 : i32, i32, i32
  }
}

</mosaic_0001>

<bundles_post_ra>
// kernel: tpu_custom_call.1
= control target key start
LH: loop header
LB: loop body
LE: loop exit
PB: predicated region body
PF: predicated region fallthrough
CT: control target
= control target key end

     0   :  { %s1067_s0 = inlined_call_operand.hbm [shape: f32[2,8,128], index: 0, kind: input, shape index: {}]   ;;  %s1068_s1 = inlined_call_operand.hbm [shape: f32[2,8,128], index: 1, kind: input, shape index: {}]   ;;  %s1069_s2 = inlined_call_operand.hbm [shape: f32[8,8], index: 2, kind: input, shape index: {}]   ;;  %s1070_s3 = inlined_call_operand.vmem [shape: f32[8,8], index: 3, kind: input, shape index: {}]   ;;  %s1071_s4 = inlined_call_operand.hbm [shape: f32[2,8,128], index: 4, kind: output, shape index: {}]  }
   0x1   :  { %1076 = sst [smem:[#allocation13_spill]] %s1069_s2 }
   0x2   :  { %9 = vsyncpa [#allocation3], 0 }
   0x3   :  { %11 = vsyncpa [#allocation3 + $0x1], 0 }
   0x4   :  { %12 = vsyncpa [#allocation6], 0 }
   0x5   :  { %14 = vsyncpa [#allocation6 + $0x1], 0 }
   0x6   :  { %15 = vsyncpa [#allocation4], 0 }
   0x7   :  { %17 = vsyncpa [#allocation4 + $0x1], 0  ;;  %s824_s15 = smov 0   ;;  %s826_s16 = smov 0  }
   0x8   :  { %s828_s17 = smov 0   ;;  %s830_s18 = smov 0  }
   0x9 LB: > { %s845_s19 = sadd.s32 4294967295, %s791_s18   ;;  %s531_s20 = sadd.s32 4294967294, %s791_s18   ;;  %s791_s18 = sphi %s830_s18, %s1099_s18   ;;  %s787_s17 = sphi %s828_s17, %s1098_s17   ;;  %s783_s16 = sphi %s826_s16, %s1097_s16   ;;  %s779_s15 = sphi %s824_s15, %s1096_s15  }
   0xa   : > { %p43_p0 = scmp.ne.s32.totalorder %s783_s16, %s779_s15  ;;  %p1072_p1 = scmp.eq.s32.totalorder %s845_s19, 0 }
   0xb   : > { %p141_p3 = scmp.eq.s32.totalorder %s531_s20, 1  ;;  %p532_p5 = scmp.ge.s32.totalorder %s791_s18, 1 }
   0xc   : > { %p854_p4 = por %p1072_p1, %p43_p0  ;;  %p148_p7 = scmp.lt.s32.totalorder %s791_s18, 3 }
   0xd   : > { %p859_p6 = por %p141_p3, %p43_p0  ;;  %s793_s24 = smov [#allocation7]  }
   0xe   : > { %s1077_s21 = scalar_select %p854_p4, 1, 0 }
   0xf   : > { %s1078_s22 = scalar_select %p859_p6, 1, 0 }
  0x10   : > { %p864_p8 = pnand %p532_p5, %p148_p7  ;;  %s161_s25 = sshll.u32 %s793_s24, 4  ;;  %s162_s25 = int_to_ptr.vmem [resolvable:$true] %s161_s25 }
  0x11   : > { %s872_s26 = sadd.s32 1, %s791_s18   ;;  %s30_s30 = sadd.s32 1, %s787_s17 }
  0x12   : > { %s1079_s23 = scalar_select %p864_p8, 1, 0 }
  0x13   : > { %p575_p10 = pneg %p864_p8  ;;  %s27_s28 = ssub.s32 %s791_s18, %s872_s26 }
  0x14   : > { %p882_p12 = scmp.eq.s32.totalorder %s27_s28, 0  ;;  %s1082_s2 = sld [smem:[#allocation13_spill]] }
  0x15   : > { %p876_p11 = pnand %p575_p10, %p1072_p1 }
  0x16   : > { %s1081_s29 = scalar_select %p882_p12, 1, 0 }
  0x17   : > { %p631_p3 = pneg %p876_p11 }
  0x1a   : > { %s629_s7 = scalar_lea.hbm %s1082_s2, 128 }
  0x1b   : > { %p630_p0 = scmp.ne.s32.totalorder %s1082_s2, %s629_s7  ;;  %p636_p10 = scmp.lt.u32.totalorder %s629_s7, %s1082_s2 }
  0x1d   : > { %p632_p5 = pnand %p631_p3, %p630_p0 }
  0x1f   : > { %p633_p7 = pneg %p632_p5 }
  0x21   : > { %p638_p9 = pnand %p636_p10, %p633_p7 }
  0x23   : > { %641 = shalt.err (!%p638_p9)
}
  0x24   : > { %s642_s12 = scalar_lea.vmem %s162_s25, 128  ;;  %p650_p6 = scmp.lt.s32.totalorder %s162_s25, %s162_s25 }
  0x25   : > { %p643_p1 = scmp.ne.s32.totalorder %s162_s25, %s642_s12  ;;  %p651_p4 = scmp.lt.s32.totalorder %s642_s12, %s642_s12 }
  0x27   : > { %p645_p2 = pnand %p643_p1, %p631_p3  ;;  %p652_p8 = por %p651_p4, %p650_p6 }
  0x29   : > { %p646_p13 = pneg %p645_p2 }
  0x2b   : > { %p653_p12 = pnand %p652_p8, %p646_p13 }
  0x2d   : > { %656 = shalt.err (!%p653_p12)
}
  0x2e   : > { %578 = dma.hbm_to_vmem [thread:$0]  (!%p876_p11), %s1082_s2, 128, %s162_s25, [#allocation6]  }
  0x2f   : > { %p1083_p1 = scmp.ne.s32.totalorder %s1081_s29, 0  ;;  %p38_p2 = scmp.eq.s32.totalorder %s791_s18, 0 }
  0x30   : > { %p1084_p4 = scmp.ne.s32.totalorder %s787_s17, %s783_s16  ;;  %p1085_p6 = scmp.eq.s32.totalorder %s845_s19, 1 }
  0x31   : > { %s908_s20 = scalar_select %p1083_p1, %s787_s17, %s30_s30  }
  0x32   : > { %p916_p8 = por %p1085_p6, %p1084_p4  ;;  %p591_p9 = scmp.lt.s32.totalorder %s791_s18, 2 }
  0x33   : > { %s175_s27 = sand.u32 1, %s787_s17   ;;  %p1087_p12 = pmov %p1084_p4 }
  0x34   : > { %s1086_s24 = scalar_select %p916_p8, 1, 0 }
  0x35   : > { %p39_p13 = por %p38_p2, %p1087_p12  ;;  %s925_s28 = sshll.u32 %s175_s27, 3 }
  0x36   : > { %s536_s5 = sshll.u32 %s791_s18, 7  ;;  %s179_s30 = scalar_lea.vmem [#allocation2], %s925_s28 }
  0x37   : > { %s931_s29 = scalar_lea.hbm %s1067_s0, %s536_s5  ;;  %s186_s7 = sshll.u32 %s179_s30, 4  ;;  %s938_s7 = int_to_ptr.vmem [resolvable:$true] %s186_s7 }
  0x38   : > { %p934_p11 = pnand %p591_p9, %p39_p13  ;;  %s943_s11 = scalar_lea.hbm %s1068_s1, %s536_s5 }
  0x39   : > { %s176_s12 = scalar_lea.sflag [#allocation3], %s175_s27  ;;  %s657_s13 = scalar_lea.hbm %s931_s29, 128 }
  0x3a   : > { %p658_p0 = scmp.ne.s32.totalorder %s931_s29, %s657_s13  ;;  %p659_p3 = pneg %p934_p11 }
  0x3b   : > { %s662_s25 = scalar_lea.hbm %s1067_s0, 256  ;;  %p663_p10 = scmp.lt.u32.totalorder %s931_s29, %s1067_s0 }
  0x3c   : > { %p660_p5 = pnand %p659_p3, %p658_p0  ;;  %p664_p1 = scmp.lt.u32.totalorder %s662_s25, %s657_s13 }
  0x3d   : > { %p666_p4 = scmp.lt.u32.totalorder %s657_s13, %s931_s29 }
  0x3e   : > { %p661_p7 = pneg %p660_p5  ;;  %p665_p2 = por %p664_p1, %p663_p10 }
  0x40   : > { %p667_p6 = por %p666_p4, %p665_p2 }
  0x42   : > { %p668_p9 = pnand %p667_p6, %p661_p7 }
  0x44   : > { %671 = shalt.err (!%p668_p9)
}
  0x45   : > { %s672_s27 = scalar_lea.vmem %s938_s7, 128  ;;  %s794_s5 = smov [#allocation2]  }
  0x46   : > { %p673_p12 = scmp.ne.s32.totalorder %s938_s7, %s672_s27  ;;  %s677_s9 = sshll.u32 %s794_s5, 4  ;;  %s678_s9 = int_to_ptr.vmem [resolvable:$false] %s677_s9 }
  0x47   : > { %s679_s2 = scalar_lea.vmem %s678_s9, 256  ;;  %p680_p5 = scmp.lt.s32.totalorder %s938_s7, %s678_s9 }
  0x48   : > { %p675_p13 = pnand %p673_p12, %p659_p3  ;;  %p681_p10 = scmp.lt.s32.totalorder %s679_s2, %s672_s27 }
  0x4a   : > { %p676_p0 = pneg %p675_p13  ;;  %p682_p1 = por %p681_p10, %p680_p5 }
  0x4c   : > { %p683_p2 = pnand %p682_p1, %p676_p0 }
  0x4e   : > { %686 = shalt.err (!%p683_p2)
}
  0x4f   : > { %582 = dma.hbm_to_vmem [thread:$0]  (!%p934_p11), %s931_s29, 128, %s938_s7, %s176_s12  }
  0x50   : > { %s193_s10 = sand.u32 1, %s791_s18   ;;  %s197_s13 = scalar_lea.vmem [#allocation5], %s925_s28 }
  0x51   : > { %s204_s14 = sshll.u32 %s197_s13, 4  ;;  %s194_s6 = scalar_lea.sflag [#allocation6], %s193_s10  ;;  %s205_s14 = int_to_ptr.vmem [resolvable:$true] %s204_s14 }
  0x52   : > { %s687_s25 = scalar_lea.hbm %s943_s11, 128  ;;  %s692_s5 = scalar_lea.hbm %s1068_s1, 256 }
  0x53   : > { %p688_p7 = scmp.ne.s32.totalorder %s943_s11, %s687_s25  ;;  %p693_p9 = scmp.lt.u32.totalorder %s943_s11, %s1068_s1 }
  0x54   : > { %p694_p12 = scmp.lt.u32.totalorder %s692_s5, %s687_s25  ;;  %p696_p0 = scmp.lt.u32.totalorder %s687_s25, %s943_s11 }
  0x55   : > { %p690_p4 = pnand %p688_p7, %p659_p3 }
  0x56   : > { %p695_p13 = por %p694_p12, %p693_p9 }
  0x57   : > { %p691_p6 = pneg %p690_p4 }
  0x58   : > { %p697_p5 = por %p696_p0, %p695_p13 }
  0x5a   : > { %p698_p10 = pnand %p697_p5, %p691_p6 }
  0x5c   : > { %701 = shalt.err (!%p698_p10)
}
  0x5d   : > { %s702_s28 = scalar_lea.vmem %s205_s14, 128  ;;  %s795_s29 = smov [#allocation5]  }
  0x5e   : > { %p703_p1 = scmp.ne.s32.totalorder %s205_s14, %s702_s28  ;;  %s707_s7 = sshll.u32 %s795_s29, 4  ;;  %s708_s7 = int_to_ptr.vmem [resolvable:$false] %s707_s7 }
  0x5f   : > { %s709_s12 = scalar_lea.vmem %s708_s7, 256  ;;  %p710_p4 = scmp.lt.s32.totalorder %s205_s14, %s708_s7 }
  0x60   : > { %p705_p2 = pnand %p703_p1, %p659_p3  ;;  %p711_p8 = scmp.lt.s32.totalorder %s709_s12, %s702_s28 }
  0x62   : > { %p706_p7 = pneg %p705_p2  ;;  %p712_p9 = por %p711_p8, %p710_p4 }
  0x64   : > { %p713_p12 = pnand %p712_p9, %p706_p7 }
  0x66   : > { %716 = shalt.err (!%p713_p12)
}
  0x67   : > { %585 = dma.hbm_to_vmem [thread:$0]  (!%p934_p11), %s943_s11, 128, %s205_s14, %s194_s6  }
  0x68   : > { %p1089_p6 = scmp.ne.s32.totalorder %s1079_s23, 0 }
  0x69   : > { %s994_s10 = sand.u32 (!%p1089_p6), 1, %s783_s16   ;;  %p1090_p8 = scmp.ne.s32.totalorder (!%p1089_p6), %s1077_s21, 0 }
  0x6a   : > { %213 = sbr.rel (%p1089_p6) target bundleno = 354 (0x162), region = 36  ;;  %s997_s13 = sshll.u32 (!%p1089_p6), %s994_s10, 3 }
  0x6b   : > { %s216_s25 = scalar_lea.sflag (!%p1089_p6), [#allocation3], %s994_s10  ;;  %s219_s30 = scalar_lea.vmem (!%p1089_p6), [#allocation2], %s997_s13 }
  0x71   : > { %762 = dma.done.wait (%p1090_p8), %s216_s25, 128  }
  0x72   : > { %764 = vsyncadd (%p1090_p8), %s216_s25, 4294967168  ;;  %s224_s23 = sand.u32 1, %s845_s19   ;;  %s228_s11 = scalar_lea.vmem [#allocation5], %s997_s13 }
  0x73   : > { %s225_s8 = scalar_lea.sflag [#allocation6], %s224_s23 }
  0x74   : > { %766 = dma.done.wait (%p1090_p8), %s225_s8, 128  }
  0x75   : > { %768 = vsyncadd (%p1090_p8), %s225_s8, 4294967168  ;;  %p1091_p11 = scmp.eq.s32.totalorder %s845_s19, 0 }
  0x77   : > { %770 = dma.done.wait (%p1091_p11), [#allocation6], 128   ;;  %p1092_p3 = pmov %p1091_p11 }
  0x78   : > { %v796_v0 = vmov 0.0   ;;  %vm797_vm0 = vmmov 0   ;;  %vm266_vm1 = vcmask 64512   ;;  %v265_v1 = vld [vmem:[%s228_s11] sm:$0xff]  ;;  %v263_v2 = vld [vmem:[%s219_s30] sm:$0xff]  ;;  %s547_s6 = sshll.u32 %s845_s19, 7 }
  0x79   : > { %772 = vsyncadd (%p1092_p3), [#allocation6], 4294967168  ;;  %554 = vmatprep.subr.mxu1 %v796_v0  ;;  %559 = vmatprep.subr.mxu0 %v796_v0  ;;  %v264_v3 = vld [vmem:[%s1070_s3] sm:$0xff]  ;;  %s261_s27 = scalar_lea.vmem [#allocation8], %s997_s13  ;;  %s1023_s28 = scalar_lea.hbm %s1071_s4, %s547_s6 }
  0x7a   : > { %556 = vmatprep.mubr.msk.f32.mxu1 %vm797_vm0, %v796_v0  ;;  %561 = vmatprep.mubr.msk.f32.mxu0 %vm797_vm0, %v796_v0  ;;  %v262_v4 = vld [vmem:[#allocation7] sm:$0xff]  ;;  %s429_s5 = sshll.u32 %s261_s27, 4  ;;  %s416_s29 = scalar_lea.sflag [#allocation4], %s994_s10  ;;  %s1025_s5 = int_to_ptr.vmem [resolvable:$true] %s429_s5 }
  0x7b   : > { %555 = vmatpush3.msra.mxu1 %v265_v1  ;;  %560 = vmatpush3.msra.mxu0 %v263_v2  ;;  %s717_s7 = scalar_lea.vmem %s1025_s5, 128  ;;  %p1093_p0 = scmp.ne.s32.totalorder %s1086_s24, 0 }
  0x7c   : > { %557 = vmatmul.mubr.msk.f32.vlgmr.msra.gmra.mrb[0].mxu1 %vm266_vm1, %v264_v3  ;;  %562 = vmatmul.mubr.msk.f32.vlgmr.msra.gmra.mrb[0].mxu0 %vm266_vm1, %v262_v4  ;;  %p718_p13 = scmp.ne.s32.totalorder %s1025_s5, %s717_s7  ;;  %s798_s19 = smov [#allocation8]  }
  0x7d   : > { %s721_s12 = sshll.u32 %s798_s19, 4  ;;  %s722_s12 = int_to_ptr.vmem [resolvable:$false] %s721_s12 }
  0x7e   : > { %p719_p5 = pnand %p718_p13, %p1093_p0  ;;  %s723_s13 = scalar_lea.vmem %s722_s12, 256 }
  0x7f   : > { %p724_p1 = scmp.lt.s32.totalorder %s1025_s5, %s722_s12  ;;  %p725_p2 = scmp.lt.s32.totalorder %s723_s13, %s717_s7 }
  0x80   : > { %p720_p10 = pneg %p719_p5 }
  0x81   : > { %p726_p7 = por %p725_p2, %p724_p1 }
  0x83   : > { %p727_p4 = pnand %p726_p7, %p720_p10 }
 0x14f   : > { %v336_v5 = vpop.f32.mrb[0].mxu1  ;;  %v409_v6 = vpop.f32.mrb[0].mxu0 }
 0x150   : > { %v410_v7 = vadd.f32 %v409_v6, %v336_v5  ;;  %v558_v8 = vpop.f32.mrb[1].mxu1  ;;  %v563_v9 = vpop.f32.mrb[1].mxu0 }
 0x152   : > { %v413_v10 = vmax.f32 %v410_v7, 0.0 }
 0x154   : > { %414 = vst [vmem:[%s261_s27] sm:$0xff] %v413_v10 }
 0x155   : > { %730 = shalt.err (!%p727_p4)
}
 0x156   : > { %s731_s10 = scalar_lea.hbm %s1023_s28, 128  ;;  %s735_s23 = scalar_lea.hbm %s1071_s4, 256 }
 0x157   : > { %p732_p9 = scmp.ne.s32.totalorder %s1023_s28, %s731_s10  ;;  %p736_p8 = scmp.lt.u32.totalorder %s1023_s28, %s1071_s4 }
 0x158   : > { %p737_p11 = scmp.lt.u32.totalorder %s735_s23, %s731_s10  ;;  %p739_p13 = scmp.lt.u32.totalorder %s731_s10, %s1023_s28 }
 0x159   : > { %p733_p12 = pnand %p732_p9, %p1093_p0 }
 0x15a   : > { %p738_p3 = por %p737_p11, %p736_p8 }
 0x15b   : > { %p734_p6 = pneg %p733_p12 }
 0x15c   : > { %p740_p5 = por %p739_p13, %p738_p3 }
 0x15e   : > { %p741_p10 = pnand %p740_p5, %p734_p6 }
 0x160   : > { %744 = shalt.err (!%p741_p10)
}
 0x161   : > { %573 = dma.vmem_to_hbm [thread:$0]  (%p1093_p0), %s1025_s5, 128, %s1023_s28, %s416_s29  }
 0x162 PF: > { %s441_s14 = sand.u32 1, %s779_s15   ;;  %p1094_p1 = scmp.ne.s32.totalorder %s1078_s22, 0 }
 0x163   : > { %p1095_p2 = scmp.ge.s32.totalorder %s791_s18, 2  ;;  %s442_s21 = scalar_lea.sflag [#allocation4], %s441_s14 }
 0x165   : > { %p587_p7 = pnand %p1095_p2, %p1094_p1 }
 0x167   : > { %774 = dma.done.wait (!%p587_p7), %s442_s21, 128  }
 0x168   : > { %776 = vsyncadd (!%p587_p7), %s442_s21, 4294967168  ;;  %p20_p4 = scmp.ge.s32.totalorder %s872_s26, 4   ;;  %s1096_s15 = smov %s783_s16 }
 0x169   : > { %s1097_s16 = smov %s787_s17  ;;  %s1098_s17 = smov %s908_s20 }
 0x16a   : > { %s1099_s18 = smov %s872_s26  ;;  %22 = sbr.rel (!%p20_p4) target bundleno = 9 (0x9), region = 98 }
 0x171   :  { %447 = vsyncpa [#allocation3], 1 }
 0x172   :  { %449 = vsyncpa [#allocation3 + $0x1], 1 }
 0x173   :  { %450 = vsyncpa [#allocation6], 1 }
 0x174   :  { %452 = vsyncpa [#allocation6 + $0x1], 1 }
 0x175   :  { %453 = vsyncpa [#allocation4], 1 }
 0x176   :  { %455 = vsyncpa [#allocation4 + $0x1], 1 }

</bundles_post_ra>
